<compile_context>
chip_gen: v5e
topology: v5e:2x2
jax: 0.10.0
libtpu: 0.0.40
codegen_flags: <defaults>
</compile_context>

<pallas_src>
import math

import jax
import jax.numpy as jnp
from jax.experimental import pallas as pl
from jax.experimental.pallas import tpu as pltpu


def _standardize_kernel(x_ref, p_ref, o_ref):
    # x_ref: (TM, W) input tile
    # p_ref: (2, W)  f32 params: row 0 = packed mean, row 1 = packed 1/(stddev+eps)
    # o_ref: (TM, W) output tile (input dtype)
    x = x_ref[...].astype(jnp.float32)
    p = p_ref[...]
    mean = p[0:1, :]
    inv = p[1:2, :]
    o_ref[...] = ((x - mean) * inv).astype(o_ref.dtype)


def _cdiv(a, b):
    return -(-a // b)


def _round_up(a, b):
    return _cdiv(a, b) * b


def _tpu_generation_params():
    """Best-effort chip introspection: (VMEM bytes per core, #TensorCores per chip)."""
    vmem_cap = 128 * 1024 * 1024
    num_tc = 1
    try:
        vmem_cap = int(pltpu.get_tpu_info().vmem_capacity_bytes)
    except Exception:
        pass
    try:
        kind = jax.devices()[0].device_kind.lower()
    except Exception:
        kind = ""
    # v7x: 64 MiB VMEM per TensorCore, 2 TensorCores per chip (v5e/v6e: 128 MiB, 1 TC).
    if "v7" in kind or vmem_cap <= 64 * 1024 * 1024:
        num_tc = 2
    return vmem_cap, num_tc


def standardize(x, mean, stddev, eps=1e-9):
    """Pallas Standardize: y = (x - mean) / (stddev + eps).

    x:      (..., F) array
    mean:   (F,) array
    stddev: (F,) array
    """
    orig_shape = x.shape
    F = int(orig_shape[-1])
    M = 1
    for d in orig_shape[:-1]:
        M *= int(d)
    M = max(M, 1)
    x2d = x.reshape(M, F)  # free: contiguous row-major view

    # O(F) parameter math once, in f32 (keeps the EUP divide out of the hot loop and
    # preserves eps/divide accuracy for low-precision inputs).
    mean_f32 = mean.astype(jnp.float32)
    inv_f32 = 1.0 / (stddev.astype(jnp.float32) + jnp.float32(eps))

    itemsize = jnp.dtype(x.dtype).itemsize
    sublane = {4: 8, 2: 16, 1: 32}.get(itemsize, 8)

    # Generation-aware VMEM budget.
    vmem_cap, num_tc = _tpu_generation_params()
    if vmem_cap <= 64 * 1024 * 1024:   # v7x (64 MiB physical per TC)
        vmem_limit = 32 * 1024 * 1024
    else:                              # v5e / v6e (128 MiB physical)
        vmem_limit = 64 * 1024 * 1024
    budget = (vmem_limit * 3) // 4
    # Per block-row working set: 2x double-buffered input + 2x output + ~2 f32 temps.
    per_row_factor = 4 * itemsize + 8

    # Lane-dense packing: fold g consecutive rows so packed width W = g*F is a multiple
    # of 128 lanes (unmasked vst).  Only when it is a *free* reshape (M % g == 0) and
    # the minimum (sublane x W) block fits the budget; otherwise keep (tm, F) blocks
    # (full last dim => HBM DMA still contiguous, no host-side pad/slice pass).
    if F % 128 == 0:
        g = 1
    else:
        g = 128 // math.gcd(F, 128)
    W = g * F
    if g > 1 and (M % g != 0 or sublane * W * per_row_factor > budget):
        g = 1
        W = F

    Mp = M // g                        # exact packed row count (no padding anywhere)
    x_packed = x2d.reshape(Mp, W)      # free: contiguous row-major view

    # Single replicated (2, W) f32 parameter block: [packed mean ; packed 1/(std+eps)].
    params = jnp.stack([jnp.tile(mean_f32, g), jnp.tile(inv_f32, g)], axis=0)

    # Row-tile: as large as the VMEM budget allows (amortize ~0.35us/grid-step),
    # sublane-aligned; single maximal block on 1-TC chips, even grid split on v7x.
    rows_target = max(sublane, (budget // (W * per_row_factor)) // sublane * sublane)

    if Mp <= sublane:
        tm = Mp                        # full-extent block (always a legal block shape)
        grid_rows = 1
    else:
        tm = max(sublane, min(rows_target, _round_up(_cdiv(Mp, num_tc), sublane)))
        if tm >= Mp:
            tm = Mp
            grid_rows = 1
        else:
            grid_rows = _cdiv(Mp, tm)
            if num_tc > 1 and grid_rows % num_tc != 0:
                # Re-balance so the grid splits evenly across both TensorCores.
                tm2 = max(sublane,
                          _round_up(_cdiv(Mp, _round_up(grid_rows, num_tc)), sublane))
                if tm2 < Mp:
                    tm = tm2
                    grid_rows = _cdiv(Mp, tm)

    out_packed = pl.pallas_call(
        _standardize_kernel,
        out_shape=jax.ShapeDtypeStruct((Mp, W), x.dtype),
        grid_spec=pltpu.PrefetchScalarGridSpec(
            num_scalar_prefetch=0,
            grid=(grid_rows,),
            in_specs=[
                pl.BlockSpec((tm, W), lambda i: (i, 0)),
                pl.BlockSpec((2, W), lambda i: (0, 0)),
            ],
            out_specs=pl.BlockSpec((tm, W), lambda i: (i, 0)),
        ),
        compiler_params=pltpu.CompilerParams(
            dimension_semantics=("parallel",),
            vmem_limit_bytes=vmem_limit,
        ),
    )(x_packed, params)

    # Free views back to the original shape (no extra HBM pass).
    return out_packed.reshape(M, F).reshape(orig_shape)


if __name__ == "__main__":
    key = jax.random.PRNGKey(0)
    kx, km, ks = jax.random.split(key, 3)
    eps = 1e-9

    # batch, atoms(seq), hidden features — matches SchNet's usage of Standardize.
    B, A, F = 2, 8, 32
    x = jax.random.normal(kx, (B, A, F), dtype=jnp.float32) * 3.0 + 1.5
    mean = jax.random.normal(km, (F,), dtype=jnp.float32)
    stddev = jax.random.uniform(ks, (F,), dtype=jnp.float32, minval=0.5, maxval=2.0)

    y = jax.block_until_ready(standardize(x, mean, stddev, eps))
    y_ref = (x - mean) / (stddev + jnp.ones_like(stddev) * eps)
    assert y.shape == x.shape and y.dtype == x.dtype
    assert jnp.allclose(y, y_ref, atol=1e-5, rtol=1e-5)

    # Odd, non-divisible shape: exercises the unpacked fallback + ragged last block.
    x2 = jax.random.normal(kx, (3, 5, 40), dtype=jnp.float32)
    m2 = jax.random.normal(km, (40,), dtype=jnp.float32)
    s2 = jax.random.uniform(ks, (40,), dtype=jnp.float32, minval=0.5, maxval=2.0)
    y2 = jax.block_until_ready(standardize(x2, m2, s2, eps))
    y2_ref = (x2 - m2) / (s2 + jnp.ones_like(s2) * eps)
    assert y2.shape == x2.shape
    assert jnp.allclose(y2, y2_ref, atol=1e-5, rtol=1e-5)

    # Larger row count: exercises the packed multi-row / multi-block path.
    x3 = jax.random.normal(kx, (4, 96, F), dtype=jnp.float32)
    y3 = jax.block_until_ready(standardize(x3, mean, stddev, eps))
    y3_ref = (x3 - mean) / (stddev + jnp.ones_like(stddev) * eps)
    assert jnp.allclose(y3, y3_ref, atol=1e-5, rtol=1e-5)

    # bf16 input: f32 accumulation in-kernel, cast back to input dtype.
    x4 = (jax.random.normal(kx, (B, A, F), dtype=jnp.float32) * 3.0).astype(jnp.bfloat16)
    y4 = jax.block_until_ready(standardize(x4, mean, stddev, eps))
    y4_ref = ((x4.astype(jnp.float32) - mean)
              / (stddev + jnp.ones_like(stddev) * eps)).astype(jnp.bfloat16)
    assert y4.dtype == jnp.bfloat16
    assert jnp.allclose(y4.astype(jnp.float32), y4_ref.astype(jnp.float32),
                        atol=2e-2, rtol=2e-2)

    print("KERNEL_OK")
</pallas_src>

<mosaic_0001>
module attributes {stable_mosaic.version = 11 : i64} {
  func.func @_standardize_kernel(%arg0: i32, %arg1: memref<4x128xf32, #tpu.memory_space<vmem>>, %arg2: memref<2x128xf32, #tpu.memory_space<vmem>>, %arg3: memref<4x128xf32, #tpu.memory_space<vmem>>) attributes {dimension_semantics = [#tpu.dimension_semantics<parallel>], iteration_bounds = array<i64: 1>, scalar_prefetch = 0 : i64, scratch_operands = 0 : i64, tpu.core_type = #tpu.core_type<tc>, window_params = [{transform_indices = @transform_0, window_bounds = array<i64: 4, 128>}, {pipeline_mode = #tpu.pipeline_mode<synchronous>, transform_indices = @transform_1, window_bounds = array<i64: 2, 128>}, {transform_indices = @transform_2, window_bounds = array<i64: 4, 128>}]} {
    %c0 = arith.constant 0 : index
    %c0_0 = arith.constant 0 : index
    %0 = vector.load %arg1[%c0, %c0_0] : memref<4x128xf32, #tpu.memory_space<vmem>>, vector<4x128xf32>
    %c0_1 = arith.constant 0 : index
    %c0_2 = arith.constant 0 : index
    %1 = vector.load %arg2[%c0_1, %c0_2] : memref<2x128xf32, #tpu.memory_space<vmem>>, vector<2x128xf32>
    %2 = vector.extract_strided_slice %1 {offsets = [0, 0], sizes = [1, 128], strides = [1, 1]} : vector<2x128xf32> to vector<1x128xf32>
    %3 = vector.extract_strided_slice %1 {offsets = [1, 0], sizes = [1, 128], strides = [1, 1]} : vector<2x128xf32> to vector<1x128xf32>
    %4 = vector.broadcast %2 : vector<1x128xf32> to vector<4x128xf32>
    %5 = arith.subf %0, %4 : vector<4x128xf32>
    %6 = vector.broadcast %3 : vector<1x128xf32> to vector<4x128xf32>
    %7 = arith.mulf %5, %6 : vector<4x128xf32>
    %c0_3 = arith.constant 0 : index
    %c0_4 = arith.constant 0 : index
    %8 = vector.load %arg3[%c0_3, %c0_4] : memref<4x128xf32, #tpu.memory_space<vmem>>, vector<4x128xf32>
    tpu.vector_store %arg3[%c0_3, %c0_4], %7 {strides = array<i32>} : memref<4x128xf32, #tpu.memory_space<vmem>>, vector<4x128xf32>,
    return
  }
  func.func @transform_0(%arg0: i32) -> (i32, i32) {
    %c0_i32 = arith.constant 0 : i32
    %c0_i32_0 = arith.constant 0 : i32
    return %arg0, %c0_i32 : i32, i32
  }
  func.func @transform_1(%arg0: i32) -> (i32, i32) {
    %c0_i32 = arith.constant 0 : i32
    %c0_i32_0 = arith.constant 0 : i32
    %c0_i32_1 = arith.constant 0 : i32
    return %c0_i32, %c0_i32_0 : i32, i32
  }
  func.func @transform_2(%arg0: i32) -> (i32, i32) {
    %c0_i32 = arith.constant 0 : i32
    %c0_i32_0 = arith.constant 0 : i32
    return %arg0, %c0_i32 : i32, i32
  }
}

</mosaic_0001>

<bundles_post_ra>
// kernel: tpu_custom_call.1
= control target key start
LH: loop header
LB: loop body
LE: loop exit
PB: predicated region body
PF: predicated region fallthrough
CT: control target
= control target key end

     0   :  { %7 = vsyncpa [#allocation3], 0  ;;  %s173_s0 = inlined_call_operand.hbm [shape: f32[4,128], index: 0, kind: input, shape index: {}]   ;;  %s174_s1 = inlined_call_operand.hbm [shape: f32[2,128], index: 1, kind: input, shape index: {}]   ;;  %s175_s2 = inlined_call_operand.hbm [shape: f32[4,128], index: 2, kind: output, shape index: {}]  }
   0x1   :  { %8 = vsyncpa [#allocation6], 0 }
   0x2   :  { %9 = vsyncpa [#allocation4], 0  ;;  %s15_s11 = sshll.u32 %s173_s0, 4  ;;  %s146_s12 = smov [#allocation2]   ;;  %s16_s11 = int_to_ptr.hbm [resolvable:$true] %s15_s11 }
   0x3   :  { %s17_s13 = sshll.u32 %s146_s12, 4  ;;  %s26_s16 = sshll.u32 %s174_s1, 4  ;;  %s18_s13 = int_to_ptr.vmem [resolvable:$true] %s17_s13  ;;  %s27_s16 = int_to_ptr.hbm [resolvable:$true] %s26_s16 }
   0x4   :  { %20 = dma.hbm_to_vmem [thread:$0]  %s16_s11, 64, %s18_s13, [#allocation3]  }
   0x5   :  { %s147_s17 = smov [#allocation5]  }
   0x6   :  { %s28_s18 = sshll.u32 %s147_s17, 4  ;;  %s29_s18 = int_to_ptr.vmem [resolvable:$true] %s28_s18 }
   0x7   :  { %31 = dma.hbm_to_vmem [thread:$0]  %s27_s16, 32, %s29_s18, [#allocation6]  }
   0x8   :  { %140 = dma.done.wait [#allocation3], 64  }
   0x9   :  { %141 = vsyncadd [#allocation3], 4294967232 }
   0xa   :  { %142 = dma.done.wait [#allocation6], 32  }
   0xb   :  { %143 = vsyncadd [#allocation6], 4294967264  ;;  %v40_v0 = vld [vmem:[#allocation2] sm:$0xf]  ;;  %v41_v1 = vld [vmem:[#allocation5] sm:$0x3] }
   0xc   :  { %v42_v2 = vperm.slane %v41_v1, 0  ;;  %v44_v3 = vperm.slane %v41_v1, 1  ;;  %s148_s0 = smov [#allocation7]   ;;  %s54_s1 = sshll.u32 %s175_s2, 4  ;;  %s55_s1 = int_to_ptr.hbm [resolvable:$true] %s54_s1 }
   0xd   :  { %s52_s19 = sshll.u32 %s148_s0, 4  ;;  %s53_s19 = int_to_ptr.vmem [resolvable:$true] %s52_s19 }
   0xe   :  { %v43_v4 = vsub.f32 %v40_v0, %v42_v2 }
  0x10   :  { %v45_v5 = vmul.f32 %v44_v3, %v43_v4 }
  0x12   :  { %46 = vst [vmem:[#allocation7] sm:$0xf] %v45_v5 }
  0x13   :  { %57 = dma.vmem_to_hbm [thread:$0]  %s53_s19, 64, %s55_s1, [#allocation4]  }
  0x14   :  { %144 = dma.done.wait [#allocation4], 64  }
  0x15   :  { %145 = vsyncadd [#allocation4], 4294967232 }
  0x16   :  { %62 = vsyncpa [#allocation3], 1 }
  0x17   :  { %63 = vsyncpa [#allocation6], 1 }
  0x18   :  { %64 = vsyncpa [#allocation4], 1 }

</bundles_post_ra>
